<compile_context>
chip_gen: v7x
topology: tpu7x:2x2x1
jax: 0.10.0
libtpu: 0.0.40
codegen_flags: <defaults>
</compile_context>

<pallas_src>
import jax
import jax.numpy as jnp
from jax.experimental import pallas as pl
from jax.experimental.pallas import tpu as pltpu


_MIN_TILE_BYTES = 2 << 20   # per-step image-tile floor (keeps step overhead amortized)
_MAX_TILE_BYTES = 8 << 20   # ceiling: 4x double-buffered footprint stays <= ~36 MiB
_MIN_GRID_STEPS = 8         # give v7x's 2 TensorCores enough blocks to shard


def _cdiv(a, b):
    return -(-a // b)


def _round_up(x, m):
    return _cdiv(x, m) * m


def _sublane_multiple(itemsize):
    # f32 native tile is (8,128); bf16 packs (16,128); int8/fp8 pack (32,128).
    return {4: 8, 2: 16, 1: 32}.get(int(itemsize), 8)


def _tile_target_bytes():
    """Generation-aware per-step tile target derived from physical VMEM."""
    try:
        vmem_cap = int(pltpu.get_tpu_info().vmem_capacity_bytes)
    except Exception:  # interpret mode / API drift: fall back to a safe value
        vmem_cap = 32 << 20
    # v7x (64 MiB VMEM) -> 8 MiB; v5e/v6e (128 MiB) -> capped at 8 MiB.
    return int(min(_MAX_TILE_BYTES, max(_MIN_TILE_BYTES, vmem_cap // 8)))


def _choose_blocks(rows, hw, in_itemsize, out_itemsize, tile_target):
    """Pick (rb, lb) block sizes and the padded slab dims (rows_pad, hw_pad)."""
    sub = max(_sublane_multiple(in_itemsize), _sublane_multiple(out_itemsize))
    bytes_per_elem = 2 * (in_itemsize + out_itemsize)  # double-buffered in + out
    budget = 4 * tile_target                           # VMEM budget for the pipeline

    # ---- lane (last-dim) block: as lane-dense as the budget allows --------
    hw_128 = _round_up(hw, 128)
    lane_cap = max(128, ((budget // (sub * bytes_per_elem)) // 128) * 128)
    n_lb = _cdiv(hw_128, lane_cap)
    lb = 128 * _cdiv(hw_128 // 128, n_lb)          # multiple of 128, minimal padding
    hw_pad = lb * n_lb

    # ---- row block: fill the budget (incl. lane-padded (rb,1) scale/bias) --
    per_row_bytes = lb * bytes_per_elem + 2 * 2 * 128 * 4
    target_rows = max(sub, ((budget // per_row_bytes) // sub) * sub)
    rows_sub = _round_up(rows, sub)
    n_rb = _cdiv(rows_sub, target_rows)
    rb = sub * _cdiv(rows_sub // sub, n_rb)
    n_rb = _cdiv(rows_sub, rb)

    # ---- keep enough grid steps for multi-TC sharding (v7x), but never -----
    # ---- shrink the image tile below the ~2 MiB amortization floor ---------
    if n_rb * n_lb < _MIN_GRID_STEPS:
        floor_rows = max(sub, ((_MIN_TILE_BYTES // max(1, lb * in_itemsize)) // sub) * sub)
        max_blocks = max(1, rows_sub // floor_rows)
        want = min(max_blocks, _cdiv(_MIN_GRID_STEPS, n_lb))
        if want > n_rb:
            n_rb = want
            rb = sub * _cdiv(rows_sub // sub, n_rb)
            n_rb = _cdiv(rows_sub, rb)

    rows_pad = rb * n_rb
    return rb, lb, rows_pad, hw_pad


def _normalize_kernel(scale_ref, bias_ref, img_ref, out_ref):
    # scale_ref / bias_ref: VMEM (rb, 1) f32, broadcast over the lane dim.
    # img_ref / out_ref:    VMEM (rb, lb) image tiles.
    x = img_ref[...].astype(jnp.float32)
    out_ref[...] = (x * scale_ref[...] + bias_ref[...]).astype(out_ref.dtype)


def normalization_forward(img, mean, std):
    """(img - mean.view(-1,1,1)) / std.view(-1,1,1) for an NCHW `img`."""
    N, C, H, W = img.shape
    rows, hw = N * C, H * W

    # PyTorch promotes (int img - float stats) to float; mirror that.
    out_dtype = jnp.result_type(img.dtype, mean.dtype, std.dtype)

    # Fold (x - mean)/std into x*scale + bias on the tiny (C,) vectors (f32).
    mean_f = mean.reshape(-1).astype(jnp.float32)
    std_f = std.reshape(-1).astype(jnp.float32)
    scale = 1.0 / std_f            # (C,)
    bias = -mean_f / std_f         # (C,)

    in_itemsize = jnp.dtype(img.dtype).itemsize
    out_itemsize = jnp.dtype(out_dtype).itemsize
    tile_target = _tile_target_bytes()
    rb, lb, rows_pad, hw_pad = _choose_blocks(
        rows, hw, in_itemsize, out_itemsize, tile_target)
    grid = (rows_pad // rb, hw_pad // lb)

    # Lane-dense 2D slab: one row per (n, c); pad only if the block grid needs it.
    img2d = img.reshape(rows, hw)
    pad_r, pad_l = rows_pad - rows, hw_pad - hw
    if pad_r or pad_l:
        img2d = jnp.pad(img2d, ((0, pad_r), (0, pad_l)))

    scale_rows = jnp.tile(scale, N).reshape(rows, 1)   # (N*C, 1) f32
    bias_rows = jnp.tile(bias, N).reshape(rows, 1)     # (N*C, 1) f32
    if pad_r:
        scale_rows = jnp.pad(scale_rows, ((0, pad_r), (0, 0)), constant_values=1.0)
        bias_rows = jnp.pad(bias_rows, ((0, pad_r), (0, 0)), constant_values=0.0)

    # Double-buffered in+out tiles + lane-padded (rb,1) stats blocks + slack.
    vmem_limit = (2 * rb * lb * (in_itemsize + out_itemsize)
                  + 2 * 2 * rb * 128 * 4
                  + (4 << 20))
    vmem_limit = max(16 << 20, int(vmem_limit))   # always < 64 MiB (v7x physical)

    out2d = pl.pallas_call(
        _normalize_kernel,
        out_shape=jax.ShapeDtypeStruct((rows_pad, hw_pad), out_dtype),
        grid_spec=pltpu.PrefetchScalarGridSpec(
            num_scalar_prefetch=0,
            grid=grid,
            in_specs=[
                pl.BlockSpec((rb, 1), lambda r, l: (r, 0)),    # scale (f32)
                pl.BlockSpec((rb, 1), lambda r, l: (r, 0)),    # bias  (f32)
                pl.BlockSpec((rb, lb), lambda r, l: (r, l)),   # image slab
            ],
            out_specs=pl.BlockSpec((rb, lb), lambda r, l: (r, l)),
        ),
        compiler_params=pltpu.CompilerParams(
            dimension_semantics=("parallel", "parallel"),
            vmem_limit_bytes=vmem_limit,
        ),
    )(scale_rows, bias_rows, img2d)

    if pad_r or pad_l:
        out2d = out2d[:rows, :hw]
    return out2d.reshape(N, C, H, W)
    # TODO(synk): for end-to-end pipelines, fuse this pass into the adjacent
    # producer/consumer kernel — standalone it is already at the HBM roofline.


if __name__ == "__main__":
    key = jax.random.PRNGKey(0)
    k_img, k_mean, k_std = jax.random.split(key, 3)

    N, C, H, W = 2, 4, 16, 16
    img = jax.random.normal(k_img, (N, C, H, W), dtype=jnp.float32)
    # Deterministic "ImageNet-like" per-channel stats (no checkpoint load).
    mean = jax.random.uniform(k_mean, (C,), dtype=jnp.float32,
                              minval=0.3, maxval=0.7)
    std = jax.random.uniform(k_std, (C,), dtype=jnp.float32,
                             minval=0.2, maxval=0.4)

    out = normalization_forward(img, mean, std)
    out = jax.block_until_ready(out)

    # Reference check in plain JAX (same broadcasting as PyTorch view(-1,1,1)).
    ref = (img - mean[None, :, None, None]) / std[None, :, None, None]
    assert out.shape == img.shape and out.dtype == ref.dtype
    assert jnp.allclose(out, ref, atol=1e-5, rtol=1e-5)

    print("KERNEL_OK")
</pallas_src>

<mosaic_0001>
module attributes {stable_mosaic.version = 11 : i64} {
  func.func @_normalize_kernel(%arg0: i32, %arg1: i32, %arg2: memref<8x1xf32, #tpu.memory_space<vmem>>, %arg3: memref<8x1xf32, #tpu.memory_space<vmem>>, %arg4: memref<8x256xf32, #tpu.memory_space<vmem>>, %arg5: memref<8x256xf32, #tpu.memory_space<vmem>>) attributes {dimension_semantics = [#tpu.dimension_semantics<parallel>, #tpu.dimension_semantics<parallel>], iteration_bounds = array<i64: 1, 1>, scalar_prefetch = 0 : i64, scratch_operands = 0 : i64, tpu.core_type = #tpu.core_type<tc>, window_params = [{transform_indices = @transform_0, window_bounds = array<i64: 8, 1>}, {transform_indices = @transform_1, window_bounds = array<i64: 8, 1>}, {transform_indices = @transform_2, window_bounds = array<i64: 8, 256>}, {transform_indices = @transform_3, window_bounds = array<i64: 8, 256>}]} {
    %c0 = arith.constant 0 : index
    %c0_0 = arith.constant 0 : index
    %0 = vector.load %arg4[%c0, %c0_0] : memref<8x256xf32, #tpu.memory_space<vmem>>, vector<8x256xf32>
    %c0_1 = arith.constant 0 : index
    %c0_2 = arith.constant 0 : index
    %1 = vector.load %arg2[%c0_1, %c0_2] : memref<8x1xf32, #tpu.memory_space<vmem>>, vector<8x1xf32>
    %2 = vector.broadcast %1 : vector<8x1xf32> to vector<8x256xf32>
    %3 = arith.mulf %0, %2 : vector<8x256xf32>
    %c0_3 = arith.constant 0 : index
    %c0_4 = arith.constant 0 : index
    %4 = vector.load %arg3[%c0_3, %c0_4] : memref<8x1xf32, #tpu.memory_space<vmem>>, vector<8x1xf32>
    %5 = vector.broadcast %4 : vector<8x1xf32> to vector<8x256xf32>
    %6 = arith.addf %3, %5 : vector<8x256xf32>
    %c0_5 = arith.constant 0 : index
    %c0_6 = arith.constant 0 : index
    %7 = vector.load %arg5[%c0_5, %c0_6] : memref<8x256xf32, #tpu.memory_space<vmem>>, vector<8x256xf32>
    tpu.vector_store %arg5[%c0_5, %c0_6], %6 {strides = array<i32>} : memref<8x256xf32, #tpu.memory_space<vmem>>, vector<8x256xf32>,
    return
  }
  func.func @transform_0(%arg0: i32, %arg1: i32) -> (i32, i32) {
    %c0_i32 = arith.constant 0 : i32
    %c0_i32_0 = arith.constant 0 : i32
    return %arg0, %c0_i32 : i32, i32
  }
  func.func @transform_1(%arg0: i32, %arg1: i32) -> (i32, i32) {
    %c0_i32 = arith.constant 0 : i32
    %c0_i32_0 = arith.constant 0 : i32
    return %arg0, %c0_i32 : i32, i32
  }
  func.func @transform_2(%arg0: i32, %arg1: i32) -> (i32, i32) {
    %c0_i32 = arith.constant 0 : i32
    return %arg0, %arg1 : i32, i32
  }
  func.func @transform_3(%arg0: i32, %arg1: i32) -> (i32, i32) {
    %c0_i32 = arith.constant 0 : i32
    return %arg0, %arg1 : i32, i32
  }
}

</mosaic_0001>

<bundles_post_ra>
// kernel: tpu_custom_call.1
= control target key start
LH: loop header
LB: loop body
LE: loop exit
PB: predicated region body
PF: predicated region fallthrough
CT: control target
= control target key end

     0   :  { %s122_s0 = inlined_call_operand.vmem [shape: f32[8,1], index: 0, kind: input, shape index: {}]   ;;  %s123_s1 = inlined_call_operand.vmem [shape: f32[8,1], index: 1, kind: input, shape index: {}]   ;;  %s124_s2 = inlined_call_operand.vmem [shape: f32[8,256], index: 2, kind: input, shape index: {}]   ;;  %s125_s3 = inlined_call_operand.hbm [shape: f32[8,256], index: 3, kind: output, shape index: {}]  }
   0x1   :  { %v17_v0 = vld [vmem:[%s122_s0] sm:$0xff] }
   0x2   :  { %8 = vsyncpa [#allocation3], 0  ;;  %v76_v1 = vmov 0   ;;  %v25_v2 = vld [vmem:[%s123_s1] sm:$0xff]  ;;  %v16_v5 = vld [vmem:[%s124_s2 + $0x8] sm:$0xff]  ;;  %s77_s20 = smov [#allocation2]  }
   0x3   :  { %51 = vset.pattern.permute.xlu0 %v76_v1  ;;  %v15_v4 = vld [vmem:[%s124_s2] sm:$0xff]  ;;  %s41_s0 = sshll.u32 %s77_s20, 4  ;;  %s42_s0 = int_to_ptr.vmem [resolvable:$true] %s41_s0 }
   0x4   :  { %20 = vperm.xlu0 %51, %v17_v0   ;;  %s52_s1 = scalar_lea.vmem %s42_s0, 256  ;;  %p57_p1 = scmp.lt.s32.totalorder %s42_s0, %s42_s0 }
   0x5   :  { %p53_p0 = scmp.ne.s32.totalorder %s42_s0, %s52_s1  ;;  %p58_p2 = scmp.lt.s32.totalorder %s52_s1, %s52_s1 }
   0x7   :  { %p59_p3 = por %p58_p2, %p57_p1 }
   0x8   :  { %28 = vperm.xlu0 %51, %v25_v2  }
   0x9   :  { %p60_p4 = pnand %p59_p3, %p53_p0 }
  0x83   :  { %v21_v3 = vpop.permute.xlu0 %20 }
  0x84   :  { %v23_v6 = vmul.f32 %v21_v3, %v15_v4  ;;  %v24_v7 = vmul.f32 %v21_v3, %v16_v5 }
  0x87   :  { %v29_v8 = vpop.permute.xlu0 %28 }
  0x88   :  { %v31_v9 = vadd.f32 %v29_v8, %v23_v6  ;;  %v32_v10 = vadd.f32 %v29_v8, %v24_v7 }
  0x8a   :  { %33 = vst [vmem:[#allocation2] sm:$0xff] %v31_v9  ;;  %34 = vst [vmem:[#allocation2 + $0x8] sm:$0xff] %v32_v10 }
  0x8b   :  { %63 = shalt.err (!%p60_p4)
}
  0x8c   :  { %s64_s2 = scalar_lea.hbm %s125_s3, 256 }
  0x8d   :  { %p65_p5 = scmp.ne.s32.totalorder %s125_s3, %s64_s2  ;;  %p68_p6 = scmp.lt.u32.totalorder %s64_s2, %s125_s3 }
  0x8f   :  { %p70_p7 = pnand %p68_p6, %p65_p5 }
  0x91   :  { %73 = shalt.err (!%p70_p7)
}
  0x92   :  { %44 = dma.vmem_to_hbm [thread:$0]  %s42_s0, 256, %s125_s3, [#allocation3]  }
  0x93   :  { %74 = dma.done.wait [#allocation3], 256  }
  0x94   :  { %75 = vsyncadd [#allocation3], 4294967040 }
  0x95   :  { %48 = vsyncpa [#allocation3], 1 }

</bundles_post_ra>
